<compile_context>
chip_gen: v7x
topology: tpu7x:2x2x1
jax: 0.10.0
libtpu: 0.0.40
codegen_flags: <defaults>
</compile_context>

<pallas_src>
import functools
import math

import jax
import jax.numpy as jnp
from jax.experimental import pallas as pl
from jax.experimental.pallas import tpu as pltpu

_VMEM_LIMIT = 64 * 1024 * 1024
_LN_EPS = 1e-5


# ----------------------------------------------------------------------------
# Fused multi-head attention + residual + LayerNorm kernel.
# Grid: (batch, q_tile); all heads handled in-kernel.
# ----------------------------------------------------------------------------
def _attn_ln_kernel(*refs, num_heads, d_k, fused_qkv, has_mask, causal, q_tile):
    it = iter(refs)
    x_ref = next(it)                                # (1, TQ, D)
    kv_ref = x_ref if fused_qkv else next(it)       # (1, Skv, D)
    mask_ref = next(it) if has_mask else None       # (1, mrows, Skv) int8
    if fused_qkv:
        wqkv_ref, bqkv_ref = next(it), next(it)     # (D, 3D) bf16, (1, 3D) f32
    else:
        wq_ref, bq_ref = next(it), next(it)         # (D, D) bf16,  (1, D)  f32
        wkv_ref, bkv_ref = next(it), next(it)       # (D, 2D) bf16, (1, 2D) f32
    wo_ref, bo_ref = next(it), next(it)             # (D, D) bf16,  (1, D)  f32
    g_ref, bt_ref = next(it), next(it)              # (1, D) f32 each
    out_ref = next(it)                              # (1, TQ, D)

    D = num_heads * d_k
    x = x_ref[0].astype(jnp.float32)                # residual path (f32)
    xb = x_ref[0].astype(jnp.bfloat16)
    scale = 1.0 / math.sqrt(d_k)

    if fused_qkv:
        qkv = jnp.dot(xb, wqkv_ref[...],
                      preferred_element_type=jnp.float32) + bqkv_ref[...]
        q = qkv[:, :D] * scale                      # fold 1/sqrt(d_k) into Q
        k = qkv[:, D:2 * D]
        v = qkv[:, 2 * D:]
    else:
        mb = kv_ref[0].astype(jnp.bfloat16)
        q = (jnp.dot(xb, wq_ref[...],
                     preferred_element_type=jnp.float32) + bq_ref[...]) * scale
        kv = jnp.dot(mb, wkv_ref[...],
                     preferred_element_type=jnp.float32) + bkv_ref[...]
        k = kv[:, :D]
        v = kv[:, D:]

    tq_sz, skv = q.shape[0], k.shape[0]
    if causal:
        q_off = pl.program_id(1) * q_tile
        row = jax.lax.broadcasted_iota(jnp.int32, (tq_sz, skv), 0) + q_off
        col = jax.lax.broadcasted_iota(jnp.int32, (tq_sz, skv), 1)
        keep = row >= col
    elif has_mask:
        keep = mask_ref[0] != 0                     # (mrows, Skv), broadcasts
    else:
        keep = None

    # Per-head attention; heads concatenated before a single full-K Wo matmul.
    outs = []
    for h in range(num_heads):
        sl = slice(h * d_k, (h + 1) * d_k)
        qh = q[:, sl].astype(jnp.bfloat16)
        kh = k[:, sl].astype(jnp.bfloat16)
        vh = v[:, sl].astype(jnp.bfloat16)
        # Contract d_k directly (no materialized K transpose).
        s = jax.lax.dot_general(qh, kh, (((1,), (1,)), ((), ())),
                                preferred_element_type=jnp.float32)
        if keep is not None:
            s = jnp.where(keep, s, -1000000000.0)
        s = s - jnp.max(s, axis=-1, keepdims=True)
        p = jnp.exp(s)
        p = p * pl.reciprocal(jnp.sum(p, axis=-1, keepdims=True), approx=True)
        outs.append(jnp.dot(p.astype(jnp.bfloat16), vh,
                            preferred_element_type=jnp.float32))
    o_cat = jnp.concatenate(outs, axis=-1).astype(jnp.bfloat16)   # (TQ, D)

    y = jnp.dot(o_cat, wo_ref[...],
                preferred_element_type=jnp.float32) + bo_ref[...]
    z = x + y                                                     # residual
    mean = jnp.mean(z, axis=-1, keepdims=True)
    var = jnp.mean((z - mean) ** 2, axis=-1, keepdims=True)
    out_ref[0] = ((z - mean) * jax.lax.rsqrt(var + _LN_EPS)
                  * g_ref[...] + bt_ref[...]).astype(out_ref.dtype)


def _pick_q_tile(s, cap=256):
    """Largest 16-aligned (then 8-aligned) divisor of s that is <= cap."""
    if s <= cap:
        return s
    for align in (16, 8):
        t = cap - (cap % align)
        while t >= align:
            if s % t == 0:
                return t
            t -= align
    return s


def _attention_ln(x, mem, mask, p, ln, num_heads, *, causal=False,
                  out_dtype=jnp.bfloat16):
    """norm(x + MHA(x, mem or x, mem or x, mask)) as one pallas_call."""
    B, Sq, D = x.shape
    d_k = D // num_heads
    is_self = mem is None
    Skv = Sq if is_self else mem.shape[1]
    has_mask = (mask is not None) and (not causal)

    mask_i8 = None
    mrows = 0
    if has_mask:
        # Torch masked_fill(mask == 0, -1e9) semantics; natural shape, int8.
        # Accepted shapes: (B, 1, Skv) or (B, Sq, Skv); squeeze any head dim
        # on the caller side.
        mask_i8 = mask.astype(jnp.int8)
        if mask_i8.ndim != 3:
            raise ValueError("mask must be (B, 1, Skv) or (B, Sq, Skv)")
        if mask_i8.shape[0] != B:
            mask_i8 = jnp.broadcast_to(mask_i8, (B,) + mask_i8.shape[1:])
        mrows = mask_i8.shape[1]
        if mrows not in (1, Sq):
            raise ValueError("mask rows must be 1 or Sq")

    # Keep the q axis untiled when a per-row mask is supplied (simple layout);
    # otherwise tile Sq so both TensorCores (v7x) / megacore get work.
    tq = Sq if (has_mask and mrows == Sq) else _pick_q_tile(Sq)
    n_q = Sq // tq
    fused_qkv = is_self and (n_q == 1)

    inputs = [x]
    in_specs = [pl.BlockSpec((1, tq, D), lambda b, qi: (b, qi, 0))]
    if not fused_qkv:
        kv_src = x if is_self else mem
        inputs.append(kv_src)
        in_specs.append(pl.BlockSpec((1, Skv, D), lambda b, qi: (b, 0, 0)))
    if has_mask:
        inputs.append(mask_i8)
        if mrows == 1:
            in_specs.append(pl.BlockSpec((1, 1, Skv), lambda b, qi: (b, 0, 0)))
        else:
            in_specs.append(pl.BlockSpec((1, tq, Skv), lambda b, qi: (b, qi, 0)))

    if fused_qkv:
        w_inputs = [p["wqkv"], p["bqkv"]]
    else:
        w_inputs = [p["wq"], p["bq"], p["wkv"], p["bkv"]]
    w_inputs += [p["wo"], p["bo"], ln["gamma"], ln["beta"]]
    inputs += w_inputs
    in_specs += [pl.BlockSpec(a.shape, lambda b, qi: (0, 0)) for a in w_inputs]

    kern = functools.partial(_attn_ln_kernel, num_heads=num_heads, d_k=d_k,
                             fused_qkv=fused_qkv, has_mask=has_mask,
                             causal=causal, q_tile=tq)
    return pl.pallas_call(
        kern,
        out_shape=jax.ShapeDtypeStruct((B, Sq, D), out_dtype),
        grid=(B, n_q),
        in_specs=in_specs,
        out_specs=pl.BlockSpec((1, tq, D), lambda b, qi: (b, qi, 0)),
        compiler_params=pltpu.CompilerParams(
            dimension_semantics=("parallel", "parallel"),
            vmem_limit_bytes=_VMEM_LIMIT),
    )(*inputs)


# ----------------------------------------------------------------------------
# Fused position-wise FFN + residual + LayerNorm kernel.
# Grid: (row_tile [parallel], d_ff_tile [arbitrary reduction]).
# ----------------------------------------------------------------------------
def _ffn_ln_kernel(x_ref, w1_ref, b1_ref, w2_ref, b2_ref, g_ref, bt_ref,
                   out_ref, acc_ref):
    j = pl.program_id(1)

    @pl.when(j == 0)
    def _init():
        acc_ref[...] = jnp.zeros_like(acc_ref)

    xb = x_ref[...].astype(jnp.bfloat16)                      # (TM, D)
    h = jnp.dot(xb, w1_ref[...],
                preferred_element_type=jnp.float32) + b1_ref[...]
    h = jnp.maximum(h, 0.0)                                   # relu (f32)
    acc_ref[...] += jnp.dot(h.astype(jnp.bfloat16), w2_ref[...],
                            preferred_element_type=jnp.float32)

    @pl.when(j == pl.num_programs(1) - 1)
    def _finalize():
        z = x_ref[...].astype(jnp.float32) + acc_ref[...] + b2_ref[...]
        mean = jnp.mean(z, axis=-1, keepdims=True)
        var = jnp.mean((z - mean) ** 2, axis=-1, keepdims=True)
        out_ref[...] = ((z - mean) * jax.lax.rsqrt(var + _LN_EPS)
                        * g_ref[...] + bt_ref[...]).astype(out_ref.dtype)


def _round_up(n, m):
    return (n + m - 1) // m * m


def _pick_ff_tile(d_ff, cap=2048):
    """Largest multiple-of-128 divisor of d_ff <= cap (else full d_ff)."""
    if d_ff <= cap:
        return d_ff
    t = cap - (cap % 128)
    while t >= 128:
        if d_ff % t == 0:
            return t
        t -= 128
    return d_ff


def _ffn_ln(x, p, ln, out_dtype=jnp.float32):
    """norm(x + FFN(x)) as one pallas_call, tiled over rows and d_ff."""
    B, S, D = x.shape
    d_ff = p["w1"].shape[1]
    n = B * S
    tm = min(512, _round_up(n, 8))
    n_pad = _round_up(n, tm)
    xf = x.reshape(n, D)
    if n_pad != n:
        xf = jnp.pad(xf, ((0, n_pad - n), (0, 0)))
    tff = _pick_ff_tile(d_ff)

    out = pl.pallas_call(
        _ffn_ln_kernel,
        out_shape=jax.ShapeDtypeStruct((n_pad, D), out_dtype),
        grid=(n_pad // tm, d_ff // tff),
        in_specs=[pl.BlockSpec((tm, D), lambda i, j: (i, 0)),
                  pl.BlockSpec((D, tff), lambda i, j: (0, j)),
                  pl.BlockSpec((1, tff), lambda i, j: (0, j)),
                  pl.BlockSpec((tff, D), lambda i, j: (j, 0)),
                  pl.BlockSpec((1, D), lambda i, j: (0, 0)),
                  pl.BlockSpec((1, D), lambda i, j: (0, 0)),
                  pl.BlockSpec((1, D), lambda i, j: (0, 0))],
        out_specs=pl.BlockSpec((tm, D), lambda i, j: (i, 0)),
        scratch_shapes=[pltpu.VMEM((tm, D), jnp.float32)],
        compiler_params=pltpu.CompilerParams(
            dimension_semantics=("parallel", "arbitrary"),
            vmem_limit_bytes=_VMEM_LIMIT),
    )(xf, p["w1"], p["b1"], p["w2"], p["b2"], ln["gamma"], ln["beta"])
    if n_pad != n:
        out = out[:n]
    return out.reshape(B, S, D)


# ----------------------------------------------------------------------------
# DecoderLayer forward (post-norm SublayerConnection, eps=1e-5).
# ----------------------------------------------------------------------------
def decoder_layer(x, memory, params, num_heads,
                  src_mask=None, tgt_mask=None, causal_tgt=False):
    # Residual stream between sublayers is carried in bf16 (upcast in-kernel).
    mem_bf16 = memory.astype(jnp.bfloat16)
    # Self-attention sublayer (causal_tgt=True generates the lower-triangular
    # target mask in-kernel; an explicit tgt_mask is ignored in that case).
    x = _attention_ln(x, None, tgt_mask, params["self_attn"], params["ln0"],
                      num_heads, causal=causal_tgt, out_dtype=jnp.bfloat16)
    # Cross-attention sublayer.
    x = _attention_ln(x, mem_bf16, src_mask, params["src_attn"], params["ln1"],
                      num_heads, causal=False, out_dtype=jnp.bfloat16)
    # Feed-forward sublayer (final output in f32).
    return _ffn_ln(x, params["ffn"], params["ln2"], out_dtype=jnp.float32)


# ----------------------------------------------------------------------------
# Deterministic parameter init (torch.nn.Linear-style uniform bounds).
# Fused QKV / KV layouts are built ONCE here (no per-call transposes).
# Matmul weights stored in bf16; biases / LayerNorm params in f32.
# ----------------------------------------------------------------------------
def _linear(key, d_in, d_out):
    k1, k2 = jax.random.split(key)
    bound = 1.0 / math.sqrt(d_in)
    w = jax.random.uniform(k1, (d_in, d_out), jnp.float32, -bound, bound)
    b = jax.random.uniform(k2, (1, d_out), jnp.float32, -bound, bound)
    return w, b


def _attn_params(keys, d_model):
    wq, bq = _linear(keys[0], d_model, d_model)
    wk, bk = _linear(keys[1], d_model, d_model)
    wv, bv = _linear(keys[2], d_model, d_model)
    wo, bo = _linear(keys[3], d_model, d_model)
    return dict(
        wq=wq.astype(jnp.bfloat16), bq=bq,
        wkv=jnp.concatenate([wk, wv], axis=1).astype(jnp.bfloat16),
        bkv=jnp.concatenate([bk, bv], axis=1),
        wqkv=jnp.concatenate([wq, wk, wv], axis=1).astype(jnp.bfloat16),
        bqkv=jnp.concatenate([bq, bk, bv], axis=1),
        wo=wo.astype(jnp.bfloat16), bo=bo,
    )


def init_params(key, d_model, d_ff):
    keys = jax.random.split(key, 10)
    ln = lambda: dict(gamma=jnp.ones((1, d_model), jnp.float32),
                      beta=jnp.zeros((1, d_model), jnp.float32))
    w1, b1 = _linear(keys[8], d_model, d_ff)
    w2, b2 = _linear(keys[9], d_ff, d_model)
    return dict(
        self_attn=_attn_params(keys[0:4], d_model),
        src_attn=_attn_params(keys[4:8], d_model),
        ffn=dict(w1=w1.astype(jnp.bfloat16), b1=b1,
                 w2=w2.astype(jnp.bfloat16), b2=b2),
        ln0=ln(), ln1=ln(), ln2=ln(),
    )


if __name__ == "__main__":
    B, S_tgt, S_src = 2, 8, 8
    d_model, num_heads, d_ff = 32, 4, 64

    key = jax.random.PRNGKey(0)
    k_x, k_mem, k_par = jax.random.split(key, 3)
    x = jax.random.normal(k_x, (B, S_tgt, d_model), jnp.float32)
    memory = jax.random.normal(k_mem, (B, S_src, d_model), jnp.float32)
    params = init_params(k_par, d_model, d_ff)

    # Causal target mask generated inside the kernel (no mask tensor DMA);
    # no source mask (mask select compiled out for the cross-attention).
    out = decoder_layer(x, memory, params, num_heads,
                        src_mask=None, tgt_mask=None, causal_tgt=True)
    jax.block_until_ready(out)
    assert out.shape == (B, S_tgt, d_model)
    assert out.dtype == jnp.float32
    assert bool(jnp.all(jnp.isfinite(out)))
    print("KERNEL_OK")
</pallas_src>

<mosaic_0001>
module attributes {stable_mosaic.version = 11 : i64} {
  func.func @_attn_ln_kernel(%arg0: i32, %arg1: i32, %arg2: memref<1x8x32xf32, #tpu.memory_space<vmem>>, %arg3: memref<32x96xbf16, #tpu.memory_space<vmem>>, %arg4: memref<1x96xf32, #tpu.memory_space<vmem>>, %arg5: memref<32x32xbf16, #tpu.memory_space<vmem>>, %arg6: memref<1x32xf32, #tpu.memory_space<vmem>>, %arg7: memref<1x32xf32, #tpu.memory_space<vmem>>, %arg8: memref<1x32xf32, #tpu.memory_space<vmem>>, %arg9: memref<1x8x32xbf16, #tpu.memory_space<vmem>>) attributes {dimension_semantics = [#tpu.dimension_semantics<parallel>, #tpu.dimension_semantics<parallel>], iteration_bounds = array<i64: 2, 1>, scalar_prefetch = 0 : i64, scratch_operands = 0 : i64, tpu.core_type = #tpu.core_type<tc>, window_params = [{transform_indices = @transform_0, window_bounds = array<i64: 1, 8, 32>}, {pipeline_mode = #tpu.pipeline_mode<synchronous>, transform_indices = @transform_1, window_bounds = array<i64: 32, 96>}, {pipeline_mode = #tpu.pipeline_mode<synchronous>, transform_indices = @transform_2, window_bounds = array<i64: 1, 96>}, {pipeline_mode = #tpu.pipeline_mode<synchronous>, transform_indices = @transform_3, window_bounds = array<i64: 32, 32>}, {pipeline_mode = #tpu.pipeline_mode<synchronous>, transform_indices = @transform_4, window_bounds = array<i64: 1, 32>}, {pipeline_mode = #tpu.pipeline_mode<synchronous>, transform_indices = @transform_5, window_bounds = array<i64: 1, 32>}, {pipeline_mode = #tpu.pipeline_mode<synchronous>, transform_indices = @transform_6, window_bounds = array<i64: 1, 32>}, {transform_indices = @transform_7, window_bounds = array<i64: 1, 8, 32>}]} {
    %c0 = arith.constant 0 : index
    %c0_0 = arith.constant 0 : index
    %c0_1 = arith.constant 0 : index
    %0 = vector.load %arg2[%c0, %c0_0, %c0_1] : memref<1x8x32xf32, #tpu.memory_space<vmem>>, vector<1x8x32xf32>
    %1 = vector.shape_cast %0 : vector<1x8x32xf32> to vector<8x32xf32>
    %c0_2 = arith.constant 0 : index
    %c0_3 = arith.constant 0 : index
    %c0_4 = arith.constant 0 : index
    %2 = vector.load %arg2[%c0_2, %c0_3, %c0_4] : memref<1x8x32xf32, #tpu.memory_space<vmem>>, vector<1x8x32xf32>
    %3 = vector.shape_cast %2 : vector<1x8x32xf32> to vector<8x32xf32>
    %4 = arith.truncf %3 : vector<8x32xf32> to vector<8x32xbf16>
    %c0_5 = arith.constant 0 : index
    %c0_6 = arith.constant 0 : index
    %5 = vector.load %arg3[%c0_5, %c0_6] : memref<32x96xbf16, #tpu.memory_space<vmem>>, vector<32x96xbf16>
    %cst = arith.constant dense<0.000000e+00> : vector<8x96xf32>
    %6 = tpu.matmul %4, %5, %cst {dimension_numbers = #tpu.dot_dimension_numbers<[1], [0], [0], [1], [0, 0, 1, 1], [], []>} : vector<8x32xbf16>, vector<32x96xbf16>, vector<8x96xf32> -> vector<8x96xf32>
    %c0_7 = arith.constant 0 : index
    %c0_8 = arith.constant 0 : index
    %7 = vector.load %arg4[%c0_7, %c0_8] : memref<1x96xf32, #tpu.memory_space<vmem>>, vector<1x96xf32>
    %8 = vector.broadcast %7 : vector<1x96xf32> to vector<8x96xf32>
    %9 = arith.addf %6, %8 : vector<8x96xf32>
    %10 = vector.extract_strided_slice %9 {offsets = [0, 0], sizes = [8, 32], strides = [1, 1]} : vector<8x96xf32> to vector<8x32xf32>
    %cst_9 = arith.constant 0.353553385 : f32
    %11 = vector.broadcast %cst_9 : f32 to vector<8x32xf32>
    %12 = arith.mulf %10, %11 : vector<8x32xf32>
    %13 = vector.extract_strided_slice %9 {offsets = [0, 32], sizes = [8, 32], strides = [1, 1]} : vector<8x96xf32> to vector<8x32xf32>
    %14 = vector.extract_strided_slice %9 {offsets = [0, 64], sizes = [8, 32], strides = [1, 1]} : vector<8x96xf32> to vector<8x32xf32>
    %c8_i32 = arith.constant 8 : i32
    %15 = arith.muli %arg1, %c8_i32 : i32
    %16 = tpu.iota {dimensions = array<i32: 0>} : vector<8x8xi32>
    %17 = vector.broadcast %15 : i32 to vector<8x8xi32>
    %18 = arith.addi %16, %17 : vector<8x8xi32>
    %19 = tpu.iota {dimensions = array<i32: 1>} : vector<8x8xi32>
    %20 = arith.cmpi sge, %18, %19 : vector<8x8xi32>
    %21 = vector.extract_strided_slice %12 {offsets = [0, 0], sizes = [8, 8], strides = [1, 1]} : vector<8x32xf32> to vector<8x8xf32>
    %22 = arith.truncf %21 : vector<8x8xf32> to vector<8x8xbf16>
    %23 = vector.extract_strided_slice %13 {offsets = [0, 0], sizes = [8, 8], strides = [1, 1]} : vector<8x32xf32> to vector<8x8xf32>
    %24 = arith.truncf %23 : vector<8x8xf32> to vector<8x8xbf16>
    %25 = vector.extract_strided_slice %14 {offsets = [0, 0], sizes = [8, 8], strides = [1, 1]} : vector<8x32xf32> to vector<8x8xf32>
    %26 = arith.truncf %25 : vector<8x8xf32> to vector<8x8xbf16>
    %cst_10 = arith.constant dense<0.000000e+00> : vector<8x8xf32>
    %27 = tpu.matmul %22, %24, %cst_10 {dimension_numbers = #tpu.dot_dimension_numbers<[1], [1], [0], [0], [0, 0, 1, 0], [], []>} : vector<8x8xbf16>, vector<8x8xbf16>, vector<8x8xf32> -> vector<8x8xf32>
    %cst_11 = arith.constant -1.000000e+09 : f32
    %28 = vector.broadcast %cst_11 : f32 to vector<8x8xf32>
    %29 = arith.select %20, %27, %28 : vector<8x8xi1>, vector<8x8xf32>
    %cst_12 = arith.constant dense<0xFF800000> : vector<8xf32>
    %30 = vector.multi_reduction <maximumf>, %29, %cst_12 [1] : vector<8x8xf32> to vector<8xf32>
    %31 = vector.shape_cast %30 : vector<8xf32> to vector<8x1xf32>
    %32 = vector.broadcast %31 : vector<8x1xf32> to vector<8x8xf32>
    %33 = arith.subf %29, %32 : vector<8x8xf32>
    %34 = math.exp %33 : vector<8x8xf32>
    %cst_13 = arith.constant dense<0.000000e+00> : vector<8xf32>
    %35 = vector.multi_reduction <add>, %34, %cst_13 [1] : vector<8x8xf32> to vector<8xf32>
    %36 = vector.shape_cast %35 : vector<8xf32> to vector<8x1xf32>
    %37 = tpu.reciprocal %36 {approx = true} : vector<8x1xf32> -> vector<8x1xf32>
    %38 = vector.broadcast %37 : vector<8x1xf32> to vector<8x8xf32>
    %39 = arith.mulf %34, %38 : vector<8x8xf32>
    %40 = arith.truncf %39 : vector<8x8xf32> to vector<8x8xbf16>
    %cst_14 = arith.constant dense<0.000000e+00> : vector<8x8xf32>
    %41 = tpu.matmul %40, %26, %cst_14 {dimension_numbers = #tpu.dot_dimension_numbers<[1], [0], [0], [1], [0, 0, 1, 1], [], []>} : vector<8x8xbf16>, vector<8x8xbf16>, vector<8x8xf32> -> vector<8x8xf32>
    %42 = vector.extract_strided_slice %12 {offsets = [0, 8], sizes = [8, 8], strides = [1, 1]} : vector<8x32xf32> to vector<8x8xf32>
    %43 = arith.truncf %42 : vector<8x8xf32> to vector<8x8xbf16>
    %44 = vector.extract_strided_slice %13 {offsets = [0, 8], sizes = [8, 8], strides = [1, 1]} : vector<8x32xf32> to vector<8x8xf32>
    %45 = arith.truncf %44 : vector<8x8xf32> to vector<8x8xbf16>
    %46 = vector.extract_strided_slice %14 {offsets = [0, 8], sizes = [8, 8], strides = [1, 1]} : vector<8x32xf32> to vector<8x8xf32>
    %47 = arith.truncf %46 : vector<8x8xf32> to vector<8x8xbf16>
    %cst_15 = arith.constant dense<0.000000e+00> : vector<8x8xf32>
    %48 = tpu.matmul %43, %45, %cst_15 {dimension_numbers = #tpu.dot_dimension_numbers<[1], [1], [0], [0], [0, 0, 1, 0], [], []>} : vector<8x8xbf16>, vector<8x8xbf16>, vector<8x8xf32> -> vector<8x8xf32>
    %cst_16 = arith.constant -1.000000e+09 : f32
    %49 = vector.broadcast %cst_16 : f32 to vector<8x8xf32>
    %50 = arith.select %20, %48, %49 : vector<8x8xi1>, vector<8x8xf32>
    %cst_17 = arith.constant dense<0xFF800000> : vector<8xf32>
    %51 = vector.multi_reduction <maximumf>, %50, %cst_17 [1] : vector<8x8xf32> to vector<8xf32>
    %52 = vector.shape_cast %51 : vector<8xf32> to vector<8x1xf32>
    %53 = vector.broadcast %52 : vector<8x1xf32> to vector<8x8xf32>
    %54 = arith.subf %50, %53 : vector<8x8xf32>
    %55 = math.exp %54 : vector<8x8xf32>
    %cst_18 = arith.constant dense<0.000000e+00> : vector<8xf32>
    %56 = vector.multi_reduction <add>, %55, %cst_18 [1] : vector<8x8xf32> to vector<8xf32>
    %57 = vector.shape_cast %56 : vector<8xf32> to vector<8x1xf32>
    %58 = tpu.reciprocal %57 {approx = true} : vector<8x1xf32> -> vector<8x1xf32>
    %59 = vector.broadcast %58 : vector<8x1xf32> to vector<8x8xf32>
    %60 = arith.mulf %55, %59 : vector<8x8xf32>
    %61 = arith.truncf %60 : vector<8x8xf32> to vector<8x8xbf16>
    %cst_19 = arith.constant dense<0.000000e+00> : vector<8x8xf32>
    %62 = tpu.matmul %61, %47, %cst_19 {dimension_numbers = #tpu.dot_dimension_numbers<[1], [0], [0], [1], [0, 0, 1, 1], [], []>} : vector<8x8xbf16>, vector<8x8xbf16>, vector<8x8xf32> -> vector<8x8xf32>
    %63 = vector.extract_strided_slice %12 {offsets = [0, 16], sizes = [8, 8], strides = [1, 1]} : vector<8x32xf32> to vector<8x8xf32>
    %64 = arith.truncf %63 : vector<8x8xf32> to vector<8x8xbf16>
    %65 = vector.extract_strided_slice %13 {offsets = [0, 16], sizes = [8, 8], strides = [1, 1]} : vector<8x32xf32> to vector<8x8xf32>
    %66 = arith.truncf %65 : vector<8x8xf32> to vector<8x8xbf16>
    %67 = vector.extract_strided_slice %14 {offsets = [0, 16], sizes = [8, 8], strides = [1, 1]} : vector<8x32xf32> to vector<8x8xf32>
    %68 = arith.truncf %67 : vector<8x8xf32> to vector<8x8xbf16>
    %cst_20 = arith.constant dense<0.000000e+00> : vector<8x8xf32>
    %69 = tpu.matmul %64, %66, %cst_20 {dimension_numbers = #tpu.dot_dimension_numbers<[1], [1], [0], [0], [0, 0, 1, 0], [], []>} : vector<8x8xbf16>, vector<8x8xbf16>, vector<8x8xf32> -> vector<8x8xf32>
    %cst_21 = arith.constant -1.000000e+09 : f32
    %70 = vector.broadcast %cst_21 : f32 to vector<8x8xf32>
    %71 = arith.select %20, %69, %70 : vector<8x8xi1>, vector<8x8xf32>
    %cst_22 = arith.constant dense<0xFF800000> : vector<8xf32>
    %72 = vector.multi_reduction <maximumf>, %71, %cst_22 [1] : vector<8x8xf32> to vector<8xf32>
    %73 = vector.shape_cast %72 : vector<8xf32> to vector<8x1xf32>
    %74 = vector.broadcast %73 : vector<8x1xf32> to vector<8x8xf32>
    %75 = arith.subf %71, %74 : vector<8x8xf32>
    %76 = math.exp %75 : vector<8x8xf32>
    %cst_23 = arith.constant dense<0.000000e+00> : vector<8xf32>
    %77 = vector.multi_reduction <add>, %76, %cst_23 [1] : vector<8x8xf32> to vector<8xf32>
    %78 = vector.shape_cast %77 : vector<8xf32> to vector<8x1xf32>
    %79 = tpu.reciprocal %78 {approx = true} : vector<8x1xf32> -> vector<8x1xf32>
    %80 = vector.broadcast %79 : vector<8x1xf32> to vector<8x8xf32>
    %81 = arith.mulf %76, %80 : vector<8x8xf32>
    %82 = arith.truncf %81 : vector<8x8xf32> to vector<8x8xbf16>
    %cst_24 = arith.constant dense<0.000000e+00> : vector<8x8xf32>
    %83 = tpu.matmul %82, %68, %cst_24 {dimension_numbers = #tpu.dot_dimension_numbers<[1], [0], [0], [1], [0, 0, 1, 1], [], []>} : vector<8x8xbf16>, vector<8x8xbf16>, vector<8x8xf32> -> vector<8x8xf32>
    %84 = vector.extract_strided_slice %12 {offsets = [0, 24], sizes = [8, 8], strides = [1, 1]} : vector<8x32xf32> to vector<8x8xf32>
    %85 = arith.truncf %84 : vector<8x8xf32> to vector<8x8xbf16>
    %86 = vector.extract_strided_slice %13 {offsets = [0, 24], sizes = [8, 8], strides = [1, 1]} : vector<8x32xf32> to vector<8x8xf32>
    %87 = arith.truncf %86 : vector<8x8xf32> to vector<8x8xbf16>
    %88 = vector.extract_strided_slice %14 {offsets = [0, 24], sizes = [8, 8], strides = [1, 1]} : vector<8x32xf32> to vector<8x8xf32>
    %89 = arith.truncf %88 : vector<8x8xf32> to vector<8x8xbf16>
    %cst_25 = arith.constant dense<0.000000e+00> : vector<8x8xf32>
    %90 = tpu.matmul %85, %87, %cst_25 {dimension_numbers = #tpu.dot_dimension_numbers<[1], [1], [0], [0], [0, 0, 1, 0], [], []>} : vector<8x8xbf16>, vector<8x8xbf16>, vector<8x8xf32> -> vector<8x8xf32>
    %cst_26 = arith.constant -1.000000e+09 : f32
    %91 = vector.broadcast %cst_26 : f32 to vector<8x8xf32>
    %92 = arith.select %20, %90, %91 : vector<8x8xi1>, vector<8x8xf32>
    %cst_27 = arith.constant dense<0xFF800000> : vector<8xf32>
    %93 = vector.multi_reduction <maximumf>, %92, %cst_27 [1] : vector<8x8xf32> to vector<8xf32>
    %94 = vector.shape_cast %93 : vector<8xf32> to vector<8x1xf32>
    %95 = vector.broadcast %94 : vector<8x1xf32> to vector<8x8xf32>
    %96 = arith.subf %92, %95 : vector<8x8xf32>
    %97 = math.exp %96 : vector<8x8xf32>
    %cst_28 = arith.constant dense<0.000000e+00> : vector<8xf32>
    %98 = vector.multi_reduction <add>, %97, %cst_28 [1] : vector<8x8xf32> to vector<8xf32>
    %99 = vector.shape_cast %98 : vector<8xf32> to vector<8x1xf32>
    %100 = tpu.reciprocal %99 {approx = true} : vector<8x1xf32> -> vector<8x1xf32>
    %101 = vector.broadcast %100 : vector<8x1xf32> to vector<8x8xf32>
    %102 = arith.mulf %97, %101 : vector<8x8xf32>
    %103 = arith.truncf %102 : vector<8x8xf32> to vector<8x8xbf16>
    %cst_29 = arith.constant dense<0.000000e+00> : vector<8x8xf32>
    %104 = tpu.matmul %103, %89, %cst_29 {dimension_numbers = #tpu.dot_dimension_numbers<[1], [0], [0], [1], [0, 0, 1, 1], [], []>} : vector<8x8xbf16>, vector<8x8xbf16>, vector<8x8xf32> -> vector<8x8xf32>
    %105 = tpu.concatenate %41, %62, %83, %104 in 1 : vector<8x8xf32>, vector<8x8xf32>, vector<8x8xf32>, vector<8x8xf32> -> vector<8x32xf32>
    %106 = arith.truncf %105 : vector<8x32xf32> to vector<8x32xbf16>
    %c0_30 = arith.constant 0 : index
    %c0_31 = arith.constant 0 : index
    %107 = vector.load %arg5[%c0_30, %c0_31] : memref<32x32xbf16, #tpu.memory_space<vmem>>, vector<32x32xbf16>
    %cst_32 = arith.constant dense<0.000000e+00> : vector<8x32xf32>
    %108 = tpu.matmul %106, %107, %cst_32 {dimension_numbers = #tpu.dot_dimension_numbers<[1], [0], [0], [1], [0, 0, 1, 1], [], []>} : vector<8x32xbf16>, vector<32x32xbf16>, vector<8x32xf32> -> vector<8x32xf32>
    %c0_33 = arith.constant 0 : index
    %c0_34 = arith.constant 0 : index
    %109 = vector.load %arg6[%c0_33, %c0_34] : memref<1x32xf32, #tpu.memory_space<vmem>>, vector<1x32xf32>
    %110 = vector.broadcast %109 : vector<1x32xf32> to vector<8x32xf32>
    %111 = arith.addf %108, %110 : vector<8x32xf32>
    %112 = arith.addf %1, %111 : vector<8x32xf32>
    %cst_35 = arith.constant dense<0.000000e+00> : vector<8xf32>
    %113 = vector.multi_reduction <add>, %112, %cst_35 [1] : vector<8x32xf32> to vector<8xf32>
    %114 = vector.shape_cast %113 : vector<8xf32> to vector<8x1xf32>
    %cst_36 = arith.constant 3.200000e+01 : f32
    %115 = vector.broadcast %cst_36 : f32 to vector<8x1xf32>
    %116 = arith.divf %114, %115 : vector<8x1xf32>
    %117 = vector.broadcast %116 : vector<8x1xf32> to vector<8x32xf32>
    %118 = arith.subf %112, %117 : vector<8x32xf32>
    %119 = arith.mulf %118, %118 : vector<8x32xf32>
    %cst_37 = arith.constant dense<0.000000e+00> : vector<8xf32>
    %120 = vector.multi_reduction <add>, %119, %cst_37 [1] : vector<8x32xf32> to vector<8xf32>
    %121 = vector.shape_cast %120 : vector<8xf32> to vector<8x1xf32>
    %cst_38 = arith.constant 3.200000e+01 : f32
    %122 = vector.broadcast %cst_38 : f32 to vector<8x1xf32>
    %123 = arith.divf %121, %122 : vector<8x1xf32>
    %124 = vector.broadcast %116 : vector<8x1xf32> to vector<8x32xf32>
    %125 = arith.subf %112, %124 : vector<8x32xf32>
    %cst_39 = arith.constant 9.99999974E-6 : f32
    %126 = vector.broadcast %cst_39 : f32 to vector<8x1xf32>
    %127 = arith.addf %123, %126 : vector<8x1xf32>
    %128 = math.rsqrt %127 : vector<8x1xf32>
    %129 = vector.broadcast %128 : vector<8x1xf32> to vector<8x32xf32>
    %130 = arith.mulf %125, %129 : vector<8x32xf32>
    %c0_40 = arith.constant 0 : index
    %c0_41 = arith.constant 0 : index
    %131 = vector.load %arg7[%c0_40, %c0_41] : memref<1x32xf32, #tpu.memory_space<vmem>>, vector<1x32xf32>
    %132 = vector.broadcast %131 : vector<1x32xf32> to vector<8x32xf32>
    %133 = arith.mulf %130, %132 : vector<8x32xf32>
    %c0_42 = arith.constant 0 : index
    %c0_43 = arith.constant 0 : index
    %134 = vector.load %arg8[%c0_42, %c0_43] : memref<1x32xf32, #tpu.memory_space<vmem>>, vector<1x32xf32>
    %135 = vector.broadcast %134 : vector<1x32xf32> to vector<8x32xf32>
    %136 = arith.addf %133, %135 : vector<8x32xf32>
    %137 = arith.truncf %136 : vector<8x32xf32> to vector<8x32xbf16>
    %c0_44 = arith.constant 0 : index
    %c0_45 = arith.constant 0 : index
    %c0_46 = arith.constant 0 : index
    %138 = vector.load %arg9[%c0_44, %c0_45, %c0_46] : memref<1x8x32xbf16, #tpu.memory_space<vmem>>, vector<1x8x32xbf16>
    %139 = vector.shape_cast %138 : vector<1x8x32xbf16> to vector<8x32xbf16>
    %140 = vector.shape_cast %137 : vector<8x32xbf16> to vector<1x8x32xbf16>
    tpu.vector_store %arg9[%c0_44, %c0_45, %c0_46], %140 {strides = array<i32>} : memref<1x8x32xbf16, #tpu.memory_space<vmem>>, vector<1x8x32xbf16>,
    return
  }
  func.func @transform_0(%arg0: i32, %arg1: i32) -> (i32, i32, i32) {
    %c0_i32 = arith.constant 0 : i32
    %c0_i32_0 = arith.constant 0 : i32
    return %arg0, %arg1, %c0_i32 : i32, i32, i32
  }
  func.func @transform_1(%arg0: i32, %arg1: i32) -> (i32, i32) {
    %c0_i32 = arith.constant 0 : i32
    %c0_i32_0 = arith.constant 0 : i32
    %c0_i32_1 = arith.constant 0 : i32
    return %c0_i32, %c0_i32_0 : i32, i32
  }
  func.func @transform_2(%arg0: i32, %arg1: i32) -> (i32, i32) {
    %c0_i32 = arith.constant 0 : i32
    %c0_i32_0 = arith.constant 0 : i32
    %c0_i32_1 = arith.constant 0 : i32
    return %c0_i32, %c0_i32_0 : i32, i32
  }
  func.func @transform_3(%arg0: i32, %arg1: i32) -> (i32, i32) {
    %c0_i32 = arith.constant 0 : i32
    %c0_i32_0 = arith.constant 0 : i32
    %c0_i32_1 = arith.constant 0 : i32
    return %c0_i32, %c0_i32_0 : i32, i32
  }
  func.func @transform_4(%arg0: i32, %arg1: i32) -> (i32, i32) {
    %c0_i32 = arith.constant 0 : i32
    %c0_i32_0 = arith.constant 0 : i32
    %c0_i32_1 = arith.constant 0 : i32
    return %c0_i32, %c0_i32_0 : i32, i32
  }
  func.func @transform_5(%arg0: i32, %arg1: i32) -> (i32, i32) {
    %c0_i32 = arith.constant 0 : i32
    %c0_i32_0 = arith.constant 0 : i32
    %c0_i32_1 = arith.constant 0 : i32
    return %c0_i32, %c0_i32_0 : i32, i32
  }
  func.func @transform_6(%arg0: i32, %arg1: i32) -> (i32, i32) {
    %c0_i32 = arith.constant 0 : i32
    %c0_i32_0 = arith.constant 0 : i32
    %c0_i32_1 = arith.constant 0 : i32
    return %c0_i32, %c0_i32_0 : i32, i32
  }
  func.func @transform_7(%arg0: i32, %arg1: i32) -> (i32, i32, i32) {
    %c0_i32 = arith.constant 0 : i32
    %c0_i32_0 = arith.constant 0 : i32
    return %arg0, %arg1, %c0_i32 : i32, i32, i32
  }
}

</mosaic_0001>

<bundles_post_ra>
// kernel: tpu_custom_call.1
= control target key start
LH: loop header
LB: loop body
LE: loop exit
PB: predicated region body
PF: predicated region fallthrough
CT: control target
= control target key end

     0   :  { %s2255_s0 = inlined_call_operand.hbm [shape: f32[2,8,32], index: 0, kind: input, shape index: {}]   ;;  %s2256_s1 = inlined_call_operand.hbm [shape: bf16[32,96], index: 1, kind: input, shape index: {}]   ;;  %s2257_s2 = inlined_call_operand.hbm [shape: f32[1,96], index: 2, kind: input, shape index: {}]   ;;  %s2258_s3 = inlined_call_operand.hbm [shape: bf16[32,32], index: 3, kind: input, shape index: {}]   ;;  %s2259_s4 = inlined_call_operand.hbm [shape: f32[1,32], index: 4, kind: input, shape index: {}]   ;;  %s2260_s5 = inlined_call_operand.hbm [shape: f32[1,32], index: 5, kind: input, shape index: {}]   ;;  %s2261_s6 = inlined_call_operand.hbm [shape: f32[1,32], index: 6, kind: input, shape index: {}]   ;;  %s2262_s7 = inlined_call_operand.hbm [shape: bf16[2,8,32], index: 7, kind: output, shape index: {}]  }
   0x1   :  { %2269 = sst [smem:[#allocation20_spill]] %s2256_s1 }
   0x2   :  { %2270 = sst [smem:[#allocation21_spill]] %s2262_s7 }
   0x3   :  { %12 = vsyncpa [#allocation3], 0 }
   0x4   :  { %14 = vsyncpa [#allocation3 + $0x1], 0 }
   0x5   :  { %15 = vsyncpa [#allocation6], 0 }
   0x6   :  { %16 = vsyncpa [#allocation9], 0 }
   0x7   :  { %17 = vsyncpa [#allocation12], 0 }
   0x8   :  { %18 = vsyncpa [#allocation4], 0 }
   0x9   :  { %20 = vsyncpa [#allocation4 + $0x1], 0  ;;  %s1839_s24 = smov 0   ;;  %s1841_s25 = smov 0  }
   0xa   :  { %s1843_s26 = smov 0   ;;  %s1845_s27 = smov 0  }
   0xb   :  { %s1847_s28 = smov 0   ;;  %s1849_s29 = smov 0  }
   0xc LB: > { %s2263_s30 = sadd.s32 4294967295, %s1771_s29   ;;  %p1189_p0 = scmp.ge.s32.totalorder %s1771_s29, 1  ;;  %s1771_s29 = sphi %s1849_s29, %s26_s29   ;;  %s1767_s28 = sphi %s1847_s28, %s2293_s28   ;;  %s1763_s27 = sphi %s1845_s27, %s2292_s27   ;;  %s1759_s26 = sphi %s1843_s26, %s2291_s26   ;;  %s1755_s25 = sphi %s1841_s25, %s2290_s25   ;;  %s1751_s24 = sphi %s1839_s24, %s2289_s24  }
   0xd   : > { %p1873_p1 = scmp.eq.s32.totalorder %s2263_s30, 0  ;;  %p225_p2 = scmp.lt.s32.totalorder %s1771_s29, 3 }
   0xe   : > { %s1773_s10 = smov [#allocation5]   ;;  %s1774_s13 = smov [#allocation8]  }
   0xf   : > { %s2271_s8 = scalar_select %p1873_p1, 1, 0 }
  0x10   : > { %p1878_p3 = pnand %p1189_p0, %p225_p2  ;;  %s237_s11 = sshll.u32 %s1773_s10, 4  ;;  %s1882_s11 = int_to_ptr.vmem [resolvable:$true] %s237_s11 }
  0x11   : > { %s261_s14 = sshll.u32 %s1774_s13, 4  ;;  %s1775_s15 = smov [#allocation11]   ;;  %s1893_s14 = int_to_ptr.vmem [resolvable:$true] %s261_s14 }
  0x12   : > { %s2272_s9 = scalar_select %p1878_p3, 1, 0 }
  0x13   : > { %p1344_p4 = pneg %p1878_p3  ;;  %s1895_s16 = sshll.u32 %s1775_s15, 4  ;;  %s287_s16 = int_to_ptr.vmem [resolvable:$true] %s1895_s16 }
  0x14   : > { %s2274_s1 = sld [smem:[#allocation20_spill]] }
  0x15   : > { %p1889_p6 = pnand %p1344_p4, %p1873_p1 }
  0x17   : > { %p1905_p8 = pneg %p1889_p6 }
  0x1a   : > { %s1479_s19 = scalar_lea.hbm %s2274_s1, 256 }
  0x1b   : > { %p1480_p7 = scmp.ne.s32.totalorder %s2274_s1, %s1479_s19  ;;  %p1486_p11 = scmp.lt.u32.totalorder %s1479_s19, %s2274_s1 }
  0x1d   : > { %p1482_p9 = pnand %p1905_p8, %p1480_p7 }
  0x1f   : > { %p1483_p10 = pneg %p1482_p9 }
  0x21   : > { %p1488_p12 = pnand %p1486_p11, %p1483_p10 }
  0x23   : > { %1491 = shalt.err (!%p1488_p12)
}
  0x24   : > { %s1492_s13 = scalar_lea.vmem %s1882_s11, 256  ;;  %p1500_p4 = scmp.lt.s32.totalorder %s1882_s11, %s1882_s11 }
  0x25   : > { %p1493_p13 = scmp.ne.s32.totalorder %s1882_s11, %s1492_s13  ;;  %p1501_p5 = scmp.lt.s32.totalorder %s1492_s13, %s1492_s13 }
  0x27   : > { %p1495_p0 = pnand %p1493_p13, %p1905_p8  ;;  %p1502_p7 = por %p1501_p5, %p1500_p4 }
  0x29   : > { %p1496_p2 = pneg %p1495_p0 }
  0x2b   : > { %p1503_p9 = pnand %p1502_p7, %p1496_p2 }
  0x2d   : > { %1506 = shalt.err (!%p1503_p9)
}
  0x2e   : > { %s1776_s15 = smov 64   ;;  %s1777_s17 = smov 4  }
  0x2f   : > { %1347 = dma.hbm_to_vmem [thread:$0]  (!%p1889_p6), %s2274_s1, 256, %s1882_s11, [#allocation6], %s1776_s15, %s1776_s15, %s1777_s17  }
  0x30   : > { %s1507_s23 = scalar_lea.hbm %s2258_s3, 256 }
  0x31   : > { %p1508_p5 = scmp.ne.s32.totalorder %s2258_s3, %s1507_s23  ;;  %p1514_p12 = scmp.lt.u32.totalorder %s1507_s23, %s2258_s3 }
  0x33   : > { %p1510_p10 = pnand %p1508_p5, %p1905_p8 }
  0x35   : > { %p1511_p11 = pneg %p1510_p10 }
  0x37   : > { %p1516_p13 = pnand %p1514_p12, %p1511_p11 }
  0x39   : > { %1519 = shalt.err (!%p1516_p13)
}
  0x3a   : > { %s1520_s11 = scalar_lea.vmem %s1893_s14, 256  ;;  %p1528_p7 = scmp.lt.s32.totalorder %s1893_s14, %s1893_s14 }
  0x3b   : > { %p1521_p0 = scmp.ne.s32.totalorder %s1893_s14, %s1520_s11  ;;  %p1529_p9 = scmp.lt.s32.totalorder %s1520_s11, %s1520_s11 }
  0x3d   : > { %p1523_p2 = pnand %p1521_p0, %p1905_p8  ;;  %p1530_p5 = por %p1529_p9, %p1528_p7 }
  0x3f   : > { %p1524_p4 = pneg %p1523_p2 }
  0x41   : > { %p1531_p10 = pnand %p1530_p5, %p1524_p4 }
  0x43   : > { %1534 = shalt.err (!%p1531_p10)
}
  0x44   : > { %1353 = dma.hbm_to_vmem [thread:$0]  (!%p1889_p6), %s2258_s3, 256, %s1893_s14, [#allocation9], %s1776_s15, %s1776_s15, %s1777_s17  }
  0x45   : > { %s1535_s20 = scalar_lea.hbm %s2260_s5, 16 }
  0x46   : > { %p1536_p11 = scmp.ne.s32.totalorder %s2260_s5, %s1535_s20  ;;  %p1542_p0 = scmp.lt.u32.totalorder %s1535_s20, %s2260_s5 }
  0x48   : > { %p1538_p12 = pnand %p1536_p11, %p1905_p8 }
  0x4a   : > { %p1539_p13 = pneg %p1538_p12 }
  0x4c   : > { %p1544_p2 = pnand %p1542_p0, %p1539_p13 }
  0x4e   : > { %1547 = shalt.err (!%p1544_p2)
}
  0x4f   : > { %s1548_s11 = scalar_lea.vmem %s287_s16, 16  ;;  %s1555_s14 = scalar_lea.vmem %s287_s16, 32 }
  0x50   : > { %p1549_p4 = scmp.ne.s32.totalorder %s287_s16, %s1548_s11  ;;  %p1556_p5 = scmp.lt.s32.totalorder %s287_s16, %s287_s16 }
  0x51   : > { %p1557_p10 = scmp.lt.s32.totalorder %s1555_s14, %s1548_s11 }
  0x52   : > { %p1551_p7 = pnand %p1549_p4, %p1905_p8 }
  0x53   : > { %p1558_p3 = por %p1557_p10, %p1556_p5 }
  0x54   : > { %p1552_p9 = pneg %p1551_p7 }
  0x56   : > { %p1559_p1 = pnand %p1558_p3, %p1552_p9 }
  0x58   : > { %1562 = shalt.err (!%p1559_p1)
}
  0x59   : > { %1359 = dma.hbm_to_vmem [thread:$0]  (!%p1889_p6), %s2260_s5, 16, %s287_s16, [#allocation12]  }
  0x5a   : > { %s1778_s7 = smov [#allocation7]   ;;  %s1779_s18 = smov [#allocation10]  }
  0x5b   : > { %s251_s30 = sshll.u32 %s1778_s7, 4  ;;  %s275_s19 = sshll.u32 %s1779_s18, 4  ;;  %s252_s30 = int_to_ptr.vmem [resolvable:$true] %s251_s30  ;;  %s276_s19 = int_to_ptr.vmem [resolvable:$true] %s275_s19 }
  0x5c   : > { %s1563_s23 = scalar_lea.hbm %s2257_s2, 16 }
  0x5d   : > { %p1564_p1 = scmp.ne.s32.totalorder %s2257_s2, %s1563_s23  ;;  %p1570_p12 = scmp.lt.u32.totalorder %s1563_s23, %s2257_s2 }
  0x5f   : > { %p1566_p3 = pnand %p1564_p1, %p1905_p8 }
  0x61   : > { %p1567_p11 = pneg %p1566_p3 }
  0x63   : > { %p1572_p13 = pnand %p1570_p12, %p1567_p11 }
  0x65   : > { %1575 = shalt.err (!%p1572_p13)
}
  0x66   : > { %s1576_s16 = scalar_lea.vmem %s252_s30, 16  ;;  %s1583_s15 = scalar_lea.vmem %s252_s30, 32 }
  0x67   : > { %p1577_p0 = scmp.ne.s32.totalorder %s252_s30, %s1576_s16  ;;  %p1584_p7 = scmp.lt.s32.totalorder %s252_s30, %s252_s30 }
  0x68   : > { %p1585_p9 = scmp.lt.s32.totalorder %s1583_s15, %s1576_s16 }
  0x69   : > { %p1579_p2 = pnand %p1577_p0, %p1905_p8 }
  0x6a   : > { %p1586_p5 = por %p1585_p9, %p1584_p7 }
  0x6b   : > { %p1580_p4 = pneg %p1579_p2 }
  0x6d   : > { %p1587_p10 = pnand %p1586_p5, %p1580_p4 }
  0x6f   : > { %1590 = shalt.err (!%p1587_p10)
}
  0x70   : > { %1350 = dma.hbm_to_vmem [thread:$0]  (!%p1889_p6), %s2257_s2, 16, %s252_s30, [#allocation6]  }
  0x71   : > { %s1591_s21 = scalar_lea.hbm %s2259_s4, 16 }
  0x72   : > { %p1592_p1 = scmp.ne.s32.totalorder %s2259_s4, %s1591_s21  ;;  %p1598_p12 = scmp.lt.u32.totalorder %s1591_s21, %s2259_s4 }
  0x74   : > { %p1594_p3 = pnand %p1592_p1, %p1905_p8 }
  0x76   : > { %p1595_p11 = pneg %p1594_p3 }
  0x78   : > { %p1600_p13 = pnand %p1598_p12, %p1595_p11 }
  0x7a   : > { %1603 = shalt.err (!%p1600_p13)
}
  0x7b   : > { %s1604_s14 = scalar_lea.vmem %s276_s19, 16  ;;  %s1611_s30 = scalar_lea.vmem %s276_s19, 32 }
  0x7c   : > { %p1605_p0 = scmp.ne.s32.totalorder %s276_s19, %s1604_s14  ;;  %p1612_p7 = scmp.lt.s32.totalorder %s276_s19, %s276_s19 }
  0x7d   : > { %p1613_p9 = scmp.lt.s32.totalorder %s1611_s30, %s1604_s14 }
  0x7e   : > { %p1607_p2 = pnand %p1605_p0, %p1905_p8 }
  0x7f   : > { %p1614_p5 = por %p1613_p9, %p1612_p7 }
  0x80   : > { %p1608_p4 = pneg %p1607_p2 }
  0x82   : > { %p1615_p10 = pnand %p1614_p5, %p1608_p4 }
  0x84   : > { %1618 = shalt.err (!%p1615_p10)
}
  0x85   : > { %1356 = dma.hbm_to_vmem [thread:$0]  (!%p1889_p6), %s2259_s4, 16, %s276_s19, [#allocation9]  }
  0x86   : > { %s1780_s17 = smov [#allocation13]   ;;  %s1619_s21 = scalar_lea.hbm %s2261_s6, 16 }
  0x87   : > { %s297_s7 = sshll.u32 %s1780_s17, 4  ;;  %p1620_p1 = scmp.ne.s32.totalorder %s2261_s6, %s1619_s21  ;;  %s298_s7 = int_to_ptr.vmem [resolvable:$true] %s297_s7 }
  0x88   : > { %p1626_p12 = scmp.lt.u32.totalorder %s1619_s21, %s2261_s6 }
  0x89   : > { %p1622_p3 = pnand %p1620_p1, %p1905_p8 }
  0x8b   : > { %p1623_p11 = pneg %p1622_p3 }
  0x8d   : > { %p1628_p13 = pnand %p1626_p12, %p1623_p11 }
  0x8f   : > { %1631 = shalt.err (!%p1628_p13)
}
  0x90   : > { %s1632_s19 = scalar_lea.vmem %s298_s7, 16  ;;  %s1639_s14 = scalar_lea.vmem %s298_s7, 32 }
  0x91   : > { %p1633_p0 = scmp.ne.s32.totalorder %s298_s7, %s1632_s19  ;;  %p1640_p7 = scmp.lt.s32.totalorder %s298_s7, %s298_s7 }
  0x92   : > { %p1641_p9 = scmp.lt.s32.totalorder %s1639_s14, %s1632_s19 }
  0x93   : > { %p1635_p2 = pnand %p1633_p0, %p1905_p8 }
  0x94   : > { %p1642_p5 = por %p1641_p9, %p1640_p7 }
  0x95   : > { %p1636_p4 = pneg %p1635_p2 }
  0x97   : > { %p1643_p10 = pnand %p1642_p5, %p1636_p4 }
  0x99   : > { %1646 = shalt.err (!%p1643_p10)
}
  0x9a   : > { %1362 = dma.hbm_to_vmem [thread:$0]  (!%p1889_p6), %s2261_s6, 16, %s298_s7, [#allocation12]  }
  0x9b   : > { %s1188_s22 = sadd.s32 4294967294, %s1771_s29   ;;  %s38_s15 = sadd.s32 1, %s1767_s28 }
  0x9c   : > { %p40_p8 = scmp.ge.s32.totalorder %s38_s15, 2  ;;  %s47_s12 = sadd.s32 1, %s1759_s26 }
  0x9d   : > { %p54_p1 = scmp.ne.s32.totalorder %s1759_s26, %s1755_s25  ;;  %p55_p3 = scmp.eq.s32.totalorder %s1771_s29, 0 }
  0x9e   : > { %s2295_s15 = smov (%p40_p8, %s38_s15), 0  ;;  %p60_p12 = scmp.ne.s32.totalorder %s1755_s25, %s1751_s24 }
  0x9f   : > { %p2030_p11 = por %p55_p3, %p54_p1  ;;  %s42_s7 = ssub.s32 %s1767_s28, %s2295_s15 }
  0xa0   : > { %s2277_s18 = sadd.s32 4294967295, %s1771_s29   ;;  %p45_p13 = scmp.eq.s32.totalorder %s42_s7, 0 }
  0xa1   : > { %p212_p6 = scmp.eq.s32.totalorder %s2277_s18, 1  ;;  %p2278_p0 = scmp.ne.s32.totalorder %s2271_s8, 0 }
  0xa2   : > { %p218_p7 = scmp.eq.s32.totalorder %s1188_s22, 1  ;;  %p1377_p5 = scmp.lt.s32.totalorder %s1771_s29, 2 }
  0xa3   : > { %p2042_p2 = por %p2278_p0, %p60_p12  ;;  %p2046_p4 = por %p212_p6, %p54_p1 }
  0xa4   : > { %s2051_s23 = scalar_select %p45_p13, %s1759_s26, %s47_s12  }
  0xa5   : > { %s2280_s21 = scalar_select %p2046_p4, 1, 0 }
  0xa6   : > { %p2053_p9 = por %p218_p7, %p60_p12  ;;  %s308_s13 = sand.u32 1, %s1759_s26  }
  0xa7   : > { %s1198_s11 = sshll.u32 %s1767_s28, 7  ;;  %s1197_s19 = sshll.u32 %s308_s13, 3 }
  0xa8   : > { %s2281_s10 = scalar_select %p2053_p9, 1, 0 }
  0xa9   : > { %s2063_s16 = scalar_lea.hbm %s2255_s0, %s1198_s11  ;;  %s312_s22 = scalar_lea.vmem [#allocation2], %s1197_s19 }
  0xaa   : > { %s320_s12 = sshll.u32 %s312_s22, 4  ;;  %p2067_p10 = pnand %p1377_p5, %p2030_p11  ;;  %s2071_s12 = int_to_ptr.vmem [resolvable:$true] %s320_s12 }
  0xab   : > { %s309_s18 = scalar_lea.sflag [#allocation3], %s308_s13  ;;  %s1647_s1 = scalar_lea.hbm %s2063_s16, 128 }
  0xac   : > { %p1648_p8 = scmp.ne.s32.totalorder %s2063_s16, %s1647_s1  ;;  %p1649_p1 = pneg %p2067_p10 }
  0xad   : > { %s1652_s17 = scalar_lea.hbm %s2255_s0, 256  ;;  %p1653_p11 = scmp.lt.u32.totalorder %s2063_s16, %s2255_s0 }
  0xae   : > { %p1650_p3 = pnand %p1649_p1, %p1648_p8  ;;  %p1654_p6 = scmp.lt.u32.totalorder %s1652_s17, %s1647_s1 }
  0xaf   : > { %p1656_p0 = scmp.lt.u32.totalorder %s1647_s1, %s2063_s16 }
  0xb0   : > { %p1651_p12 = pneg %p1650_p3  ;;  %p1655_p13 = por %p1654_p6, %p1653_p11 }
  0xb2   : > { %p1657_p7 = por %p1656_p0, %p1655_p13 }
  0xb4   : > { %p1658_p5 = pnand %p1657_p7, %p1651_p12 }
  0xb6   : > { %1661 = shalt.err (!%p1658_p5)
}
  0xb7   : > { %s1662_s13 = scalar_lea.vmem %s2071_s12, 128  ;;  %s1781_s22 = smov [#allocation2]  }
  0xb8   : > { %p1663_p8 = scmp.ne.s32.totalorder %s2071_s12, %s1662_s13  ;;  %s1667_s11 = sshll.u32 %s1781_s22, 4  ;;  %s1668_s11 = int_to_ptr.vmem [resolvable:$false] %s1667_s11 }
  0xb9   : > { %s1669_s19 = scalar_lea.vmem %s1668_s11, 256  ;;  %p1670_p4 = scmp.lt.s32.totalorder %s2071_s12, %s1668_s11 }
  0xba   : > { %p1665_p3 = pnand %p1663_p8, %p1649_p1  ;;  %p1671_p11 = scmp.lt.s32.totalorder %s1669_s19, %s1662_s13 }
  0xbc   : > { %p1666_p9 = pneg %p1665_p3  ;;  %p1672_p6 = por %p1671_p11, %p1670_p4 }
  0xbe   : > { %p1673_p13 = pnand %p1672_p6, %p1666_p9 }
  0xc0   : > { %1676 = shalt.err (!%p1673_p13)
}
  0xc1   : > { %1366 = dma.hbm_to_vmem [thread:$0]  (!%p2067_p10), %s2063_s16, 128, %s2071_s12, %s309_s18  }
  0xc2   : > { %p2283_p12 = scmp.ne.s32.totalorder %s2272_s9, 0 }
  0xc3   : > { %s2101_s1 = sand.u32 (!%p2283_p12), 1, %s1755_s25  }
  0xc4   : > { %329 = sbr.rel (%p2283_p12) target bundleno = 2026 (0x7ea), region = 48  ;;  %s1200_s17 = sshll.u32 (!%p2283_p12), %s2101_s1, 3 }
  0xc5   : > { %s332_s14 = scalar_lea.sflag (!%p2283_p12), [#allocation3], %s2101_s1  ;;  %s335_s30 = scalar_lea.vmem (!%p2283_p12), [#allocation2], %s1200_s17 }
  0xcb   : > { %1730 = dma.done.wait (%p2042_p2), %s332_s14, 128  }
  0xcc   : > { %1732 = vsyncadd (%p2042_p2), %s332_s14, 4294967168  ;;  %p2284_p4 = scmp.ne.s32.totalorder %s2271_s8, 0 }
  0xce   : > { %1734 = dma.done.wait (%p2284_p4), [#allocation6], 272  }
  0xcf   : > { %1736 = vsyncadd (%p2284_p4), [#allocation6], 4294967024 }
  0xd0   : > { %1738 = dma.done.wait (%p2284_p4), [#allocation9], 272  }
  0xd1   : > { %1740 = vsyncadd (%p2284_p4), [#allocation9], 4294967024 }
  0xd2   : > { %1742 = dma.done.wait (%p2284_p4), [#allocation12], 32  }
  0xd3   : > { %1744 = vsyncadd (%p2284_p4), [#allocation12], 4294967264  ;;  %v1782_v0 = vmov 0.0   ;;  %vm1783_vm0 = vmmov 0   ;;  %v1457_v1 = vld [vmem:[#allocation5] sm:$0xff]   ;;  %v1458_v2 = vld [vmem:[#allocation5 + $0x8] sm:$0xff]   ;;  %v462_v25 = vlaneseq }
  0xd4   : > { %1252 = vmatprep.subr.bf16.mxu0 %v1782_v0  ;;  %1256 = vmatprep.mubr.msk.bf16.mxu0 %vm1783_vm0, %v1782_v0  ;;  %v2127_v3 = vld [vmem:[%s335_s30] sm:$0xff]  ;;  %vm416_vm1 = vcmask 261120   ;;  %s1784_s8 = smov 96   ;;  %s1785_s9 = smov 120   ;;  %vm474_vm2 = vcmask 64512   ;;  %vm539_vm4 = vcmask 1043456  }
  0xd5   : > { %1260 = vmatprep.subr.bf16.mxu1 %v1782_v0  ;;  %1262 = vmatprep.mubr.msk.bf16.mxu1 %vm1783_vm0, %v1782_v0  ;;  %v392_v4 = vpack.c.bf16 %v2127_v3, %v2127_v3  ;;  %v1208_v5 = vld [vmem:[#allocation7] ss:$0 sm:$0xff]  ;;  %s1786_s20 = smov 88   ;;  %s1787_s16 = smov 80   ;;  %v463_v26 = vshrl.u32 %v462_v25, 7  ;;  %v467_v27 = vand.u32 127, %v462_v25 }
  0xd6   : > { %1253 = vmatpush3.bf16.msra.mxu0 %v1457_v1  ;;  %s1788_s12 = smov 112   ;;  %s1789_s7 = smov 72   ;;  %vm930_vm5 = vcmask 130048   ;;  %vm932_vm6 = vcmask 195584   ;;  %vm1033_vm7 = vcmask 257024  }
  0xd7   : > { %1254 = vmatprep.subr.bf16.mxu0 %v1782_v0  ;;  %s1790_s18 = smov 104   ;;  %vm468_vm3 = vcmp.ge.s32.totalorder %v463_v26, %v467_v27  ;;  %s1791_s13 = smov 56  }
  0xd8   : > { %s1792_s22 = smov 64   ;;  %s1793_s11 = smov 40  }
  0xd9   : > { %s1794_s19 = smov 48   ;;  %s1795_s17 = smov 8  }
  0xda   : > { %1255 = vmatpush3.bf16.msra.mxu0 %v1458_v2  ;;  %s1796_s14 = smov 16   ;;  %s1797_s30 = smov 24  }
  0xdb   : > { %1266 = vmatprep.subr.bf16.mxu0 %v1782_v0  ;;  %p2286_p9 = scmp.ne.s32.totalorder %s2280_s21, 0 }
  0xdd   : > { %1257 = vmatmul.mubr.msk.bf16.vlgmr.msra.gmra.mrb[0].mxu0 %vm416_vm1, %v392_v4 }
  0xde   : > { %1268 = vmatprep.mubr.msk.bf16.mxu0 %vm1783_vm0, %v1782_v0 }
 0x1b0   : > { %v454_v6 = vpop.f32.mrb[0].mxu0 }
 0x1b1   : > { %v455_v7 = vadd.f32 %v1208_v5, %v454_v6  ;;  %v1258_v8 = vpop.f32.mrb[1].mxu0 }
 0x1b2   : > { %v457_v9 = vpop.f32.mrb[2].mxu0 }
 0x1b3   : > { %v460_v10 = vmul.f32 0.35355338, %v455_v7  ;;  %v2136_v11 = vpack.c.bf16 %v455_v7, %v455_v7  ;;  %v1259_v12 = vpop.f32.mrb[3].mxu0 }
 0x1b5   : > { %v469_v13 = vpack.c.bf16 %v460_v10, %v460_v10  ;;  %472 = vrot.lane.b32.xlu0 %v2136_v11, %s1784_s8  ;;  %s1207_s8 = sshll.u32 %s2101_s1, 2 }
 0x1b7   : > { %584 = vrot.lane.b32.xlu1 %v469_v13, %s1785_s9  ;;  %s1227_s9 = sshll.u32 %s1763_s27, 6  ;;  %s1798_s27 = smov [#allocation14]  }
 0x1b9   : > { %586 = vrot.lane.b32.xlu0 %v2136_v11, %s1786_s20  ;;  %s389_s20 = scalar_lea.vmem [#allocation14], %s1207_s8 }
 0x1bb   : > { %697 = vrot.lane.b32.xlu1 %v2136_v11, %s1787_s16  ;;  %s1050_s16 = sshll.u32 %s389_s20, 4  ;;  %s2208_s16 = int_to_ptr.vmem [resolvable:$true] %s1050_s16 }
 0x1bd   : > { %695 = vrot.lane.b32.xlu0 %v469_v13, %s1788_s12 }
 0x1bf   : > { %808 = vrot.lane.b32.xlu1 %v2136_v11, %s1789_s7 }
 0x1c1   : > { %806 = vrot.lane.b32.xlu0 %v469_v13, %s1790_s18  ;;  %s2285_s18 = sld [smem:[#allocation21_spill]] }
 0x227   : > { %v473_v14 = vpop.permute.xlu0 %472 }
 0x228   : > { %v479_v15 = vsel %vm474_vm2, %v473_v14, 0 }
 0x229   : > { %1261 = vmatpush3.bf16.xpose.msra.mxu1 %v479_v15  ;;  %v585_v17 = vpop.permute.xlu1 %584 }
 0x22a   : > { %1272 = vmatprep.subr.bf16.mxu1 %v1782_v0 }
 0x22b   : > { %v587_v16 = vpop.permute.xlu0 %586 }
 0x22c   : > { %v592_v18 = vsel %vm474_vm2, %v587_v16, 0 }
 0x22d   : > { %v698_v19 = vpop.permute.xlu1 %697 }
 0x22e   : > { %v703_v20 = vsel %vm474_vm2, %v698_v19, 0 }
 0x22f   : > { %v696_v22 = vpop.permute.xlu0 %695 }
 0x230   : > { %1263 = vmatmul.mubr.msk.bf16.vlgmr.msra.gmra.mrb[0].mxu1 %vm474_vm2, %v469_v13 }
 0x231   : > { %1273 = vmatpush3.bf16.xpose.msra.mxu1 %v592_v18  ;;  %1274 = vmatprep.mubr.msk.bf16.mxu1 %vm1783_vm0, %v1782_v0  ;;  %v809_v21 = vpop.permute.xlu1 %808 }
 0x232   : > { %1284 = vmatprep.subr.bf16.mxu1 %v1782_v0  ;;  %v814_v23 = vsel %vm474_vm2, %v809_v21, 0 }
 0x233   : > { %v807_v24 = vpop.permute.xlu0 %806 }
 0x238   : > { %1275 = vmatmul.mubr.msk.bf16.vlgmr.msra.gmra.mrb[4].mxu1 %vm474_vm2, %v585_v17 }
 0x239   : > { %1285 = vmatpush3.bf16.xpose.msra.mxu1 %v703_v20  ;;  %1286 = vmatprep.mubr.msk.bf16.mxu1 %vm1783_vm0, %v1782_v0 }
 0x23a   : > { %1296 = vmatprep.subr.bf16.mxu1 %v1782_v0 }
 0x240   : > { %1287 = vmatmul.mubr.msk.bf16.vlgmr.msra.gmra.mrb[8].mxu1 %vm474_vm2, %v696_v22 }
 0x241   : > { %1297 = vmatpush3.bf16.xpose.msra.mxu1 %v814_v23  ;;  %1298 = vmatprep.mubr.msk.bf16.mxu1 %vm1783_vm0, %v1782_v0 }
 0x242   : > { %1308 = vmatprep.subr.bf16.mxu1 %v1782_v0 }
 0x248   : > { %1299 = vmatmul.mubr.msk.bf16.vlgmr.msra.gmra.mrb[12].mxu1 %vm474_vm2, %v807_v24 }
 0x249   : > { %1312 = vmatprep.mubr.msk.bf16.mxu1 %vm1783_vm0, %v1782_v0 }
 0x303   : > { %v515_v28 = vpop.f32.mrb[0].mxu1 }
 0x304   : > { %v521_v29 = vsel %vm468_vm3, %v515_v28, -1e+09  ;;  %v1264_v30 = vpop.f32.mrb[1].mxu1 }
 0x305   : > { %v518_v31 = vpop.f32.mrb[2].mxu1  ;;  %v522_v32 = vsel %vm474_vm2, %v521_v29, -inf }
 0x306   : > { %523 = vmax.xlane.f32.xlu1 %v522_v32  ;;  %v1265_v33 = vpop.f32.mrb[3].mxu1 }
 0x30b   : > { %v628_v34 = vpop.f32.mrb[4].mxu1 }
 0x30c   : > { %v634_v35 = vsel %vm468_vm3, %v628_v34, -1e+09  ;;  %v1276_v36 = vpop.f32.mrb[5].mxu1 }
 0x30d   : > { %v631_v37 = vpop.f32.mrb[6].mxu1  ;;  %v635_v38 = vsel %vm474_vm2, %v634_v35, -inf }
 0x30e   : > { %636 = vmax.xlane.f32.xlu0 %v635_v38  ;;  %v1277_v39 = vpop.f32.mrb[7].mxu1 }
 0x313   : > { %v739_v40 = vpop.f32.mrb[8].mxu1 }
 0x314   : > { %v745_v41 = vsel %vm468_vm3, %v739_v40, -1e+09  ;;  %v1288_v42 = vpop.f32.mrb[9].mxu1 }
 0x315   : > { %v742_v43 = vpop.f32.mrb[10].mxu1  ;;  %v746_v44 = vsel %vm474_vm2, %v745_v41, -inf  ;;  %v1459_v42 = vld [vmem:[#allocation8] sm:$0xff]  }
 0x316   : > { %747 = vmax.xlane.f32.xlu0 %v746_v44  ;;  %v1289_v45 = vpop.f32.mrb[11].mxu1  ;;  %1309 = vmatpush3.bf16.msra.mxu1 %v1459_v42  ;;  %v1460_v43 = vld [vmem:[#allocation8 + $0x8] sm:$0xff]  }
 0x317   : > { %1310 = vmatprep.subr.bf16.mxu1 %v1782_v0 }
 0x31a   : > { %1311 = vmatpush3.bf16.msra.mxu1 %v1460_v43 }
 0x31b   : > { %v850_v46 = vpop.f32.mrb[12].mxu1 }
 0x31c   : > { %v856_v47 = vsel %vm468_vm3, %v850_v46, -1e+09  ;;  %v1300_v48 = vpop.f32.mrb[13].mxu1 }
 0x31d   : > { %v853_v49 = vpop.f32.mrb[14].mxu1  ;;  %v857_v50 = vsel %vm474_vm2, %v856_v47, -inf }
 0x31e   : > { %858 = vmax.xlane.f32.xlu1 %v857_v50  ;;  %v1301_v51 = vpop.f32.mrb[15].mxu1 }
 0x393   : > { %v524_v52 = vpop.xlane.xlu1 %523 }
 0x394   : > { %v525_v53 = vsub.f32 %v521_v29, %v524_v52 }
 0x396   : > { %v526_v54 = vmul.f32 1.442695, %v525_v53 }
 0x398   : > { %1461 = vpow2.f32 %v526_v54 }
 0x39b   : > { %v637_v55 = vpop.xlane.xlu0 %636 }
 0x39c   : > { %v638_v56 = vsub.f32 %v634_v35, %v637_v55 }
 0x39e   : > { %v639_v57 = vmul.f32 1.442695, %v638_v56 }
 0x3a0   : > { %1463 = vpow2.f32 %v639_v57 }
 0x3a2   : > { %v1462_v58 = vpop.eup %1461 }
 0x3a3   : > { %v748_v59 = vpop.xlane.xlu0 %747  ;;  %v528_v60 = vsel %vm474_vm2, %v1462_v58, 0.0 }
 0x3a4   : > { %v749_v61 = vsub.f32 %v745_v41, %v748_v59  ;;  %529 = vadd.xlane.f32.xlu0 %v528_v60 }
 0x3a6   : > { %v750_v62 = vmul.f32 1.442695, %v749_v61 }
 0x3a8   : > { %1465 = vpow2.f32 %v750_v62 }
 0x3aa   : > { %v1464_v63 = vpop.eup %1463 }
 0x3ab   : > { %v641_v1 = vsel %vm474_vm2, %v1464_v63, 0.0  ;;  %v859_v5 = vpop.xlane.xlu1 %858 }
 0x3ac   : > { %642 = vadd.xlane.f32.xlu1 %v641_v1  ;;  %v860_v6 = vsub.f32 %v856_v47, %v859_v5 }
 0x3ae   : > { %v861_v7 = vmul.f32 1.442695, %v860_v6 }
 0x3b0   : > { %1467 = vpow2.f32 %v861_v7 }
 0x3b2   : > { %v1466_v2 = vpop.eup %1465 }
 0x3b3   : > { %v752_v4 = vsel %vm474_vm2, %v1466_v2, 0.0 }
 0x3b4   : > { %753 = vadd.xlane.f32.xlu0 %v752_v4 }
 0x3ba   : > { %v1468_v8 = vpop.eup %1467 }
 0x3bb   : > { %v863_v9 = vsel %vm474_vm2, %v1468_v8, 0.0 }
 0x3bd   : > { %647 = vrot.lane.b32.xlu1 %v2136_v11, %s1791_s13  ;;  %s2206_s13 = scalar_lea.hbm %s2285_s18, %s1227_s9 }
 0x3ca   : > { %534 = vrot.lane.b32.xlu0 %v2136_v11, %s1792_s22  ;;  %s1036_s22 = scalar_lea.sflag [#allocation4], %s2101_s1 }
 0x3ce   : > { %869 = vrot.lane.b32.xlu0 %v2136_v11, %s1793_s11  ;;  %s1677_s11 = scalar_lea.vmem %s2208_s16, 64 }
 0x3cf   : > { %p1678_p2 = scmp.ne.s32.totalorder %s2208_s16, %s1677_s11 }
 0x3d1   : > { %p1679_p10 = pnand %p1678_p2, %p2286_p9 }
 0x3d3   : > { %p1680_p1 = pneg %p1679_p10 }
 0x3e1   : > { %864 = vadd.xlane.f32.xlu1 %v863_v9 }
 0x3f2   : > { %758 = vrot.lane.b32.xlu1 %v2136_v11, %s1794_s19  ;;  %s1681_s19 = sshll.u32 %s1798_s27, 4  ;;  %s1682_s19 = int_to_ptr.vmem [resolvable:$false] %s1681_s19 }
 0x3f3   : > { %p1684_p0 = scmp.lt.s32.totalorder %s2208_s16, %s1682_s19 }
 0x431   : > { %v530_v10 = vpop.xlane.xlu0 %529 }
 0x432   : > { %1469 = vrcp.f32 %v530_v10 }
 0x439   : > { %v643_v12 = vpop.xlane.xlu1 %642 }
 0x43a   : > { %1471 = vrcp.f32 %v643_v12 }
 0x43c   : > { %v1470_v13 = vpop.eup %1469 }
 0x43d   : > { %v532_v15 = vmul.f32 %v1470_v13, %v1462_v58  ;;  %v648_v18 = vpop.permute.xlu1 %647  ;;  %v1220_v58 = vld [vmem:[#allocation10] ss:$0 sm:$0xff] }
 0x43e   : > { %v653_v21 = vsel %vm539_vm4, %v648_v18, 0 }
 0x43f   : > { %v533_v19 = vpack.c.bf16 %v532_v15, %v532_v15  ;;  %v1225_v15 = vld [vmem:[#allocation13] ss:$0 sm:$0xff] }
 0x441   : > { %v754_v14 = vpop.xlane.xlu0 %753 }
 0x442   : > { %1473 = vrcp.f32 %v754_v14  ;;  %v1224_v14 = vld [vmem:[#allocation11] ss:$0 sm:$0xff] }
 0x444   : > { %v1472_v20 = vpop.eup %1471 }
 0x445   : > { %v535_v16 = vpop.permute.xlu0 %534  ;;  %v645_v11 = vmul.f32 %v1472_v20, %v1464_v63 }
 0x446   : > { %v541_v17 = vsel %vm539_vm4, %v535_v16, 0 }
 0x447   : > { %1267 = vmatpush3.bf16.msra.mxu0 %v541_v17  ;;  %v646_v22 = vpack.c.bf16 %v645_v11, %v645_v11 }
 0x448   : > { %1278 = vmatprep.subr.bf16.mxu0 %v1782_v0 }
 0x449   : > { %v870_v28 = vpop.permute.xlu0 %869 }
 0x44a   : > { %1269 = vmatmul.mubr.msk.bf16.vlgmr.msra.gmra.mrb[4].mxu0 %vm474_vm2, %v533_v19  ;;  %v875_v30 = vsel %vm539_vm4, %v870_v28, 0 }
 0x44b   : > { %1279 = vmatpush3.bf16.msra.mxu0 %v653_v21  ;;  %1280 = vmatprep.mubr.msk.bf16.mxu0 %vm1783_vm0, %v1782_v0 }
 0x44c   : > { %1290 = vmatprep.subr.bf16.mxu0 %v1782_v0  ;;  %v1474_v23 = vpop.eup %1473 }
 0x44d   : > { %v756_v25 = vmul.f32 %v1474_v23, %v1466_v2 }
 0x44f   : > { %v757_v29 = vpack.c.bf16 %v756_v25, %v756_v25 }
 0x452   : > { %1281 = vmatmul.mubr.msk.bf16.vlgmr.msra.gmra.mrb[8].mxu0 %vm474_vm2, %v646_v22 }
 0x453   : > { %1292 = vmatprep.mubr.msk.bf16.mxu0 %vm1783_vm0, %v1782_v0 }
 0x46e   : > { %v865_v24 = vpop.xlane.xlu1 %864 }
 0x46f   : > { %1475 = vrcp.f32 %v865_v24 }
 0x472   : > { %v759_v26 = vpop.permute.xlu1 %758 }
 0x473   : > { %v764_v27 = vsel %vm539_vm4, %v759_v26, 0 }
 0x474   : > { %1291 = vmatpush3.bf16.msra.mxu0 %v764_v27 }
 0x475   : > { %1302 = vmatprep.subr.bf16.mxu0 %v1782_v0 }
 0x477   : > { %1293 = vmatmul.mubr.msk.bf16.vlgmr.msra.gmra.mrb[12].mxu0 %vm474_vm2, %v757_v29 }
 0x478   : > { %1303 = vmatpush3.bf16.msra.mxu0 %v875_v30  ;;  %1304 = vmatprep.mubr.msk.bf16.mxu0 %vm1783_vm0, %v1782_v0 }
 0x479   : > { %v1476_v31 = vpop.eup %1475 }
 0x47a   : > { %v867_v32 = vmul.f32 %v1476_v31, %v1468_v8 }
 0x47c   : > { %v868_v33 = vpack.c.bf16 %v867_v32, %v867_v32 }
 0x47f   : > { %1305 = vmatmul.mubr.msk.bf16.vlgmr.msra.gmra.mrb[16].mxu0 %vm474_vm2, %v868_v33 }
 0x51d   : > { %v577_v34 = vpop.f32.mrb[4].mxu0 }
 0x51e   : > { %v1270_v35 = vpop.f32.mrb[5].mxu0 }
 0x51f   : > { %v580_v36 = vpop.f32.mrb[6].mxu0 }
 0x520   : > { %v1271_v37 = vpop.f32.mrb[7].mxu0 }
 0x525   : > { %v689_v38 = vpop.f32.mrb[8].mxu0 }
 0x526   : > { %918 = vrot.lane.b32.xlu1 %v689_v38, %s1795_s17  ;;  %v1282_v39 = vpop.f32.mrb[9].mxu0  ;;  %s1683_s17 = scalar_lea.vmem %s1682_s19, 128 }
 0x527   : > { %v692_v40 = vpop.f32.mrb[10].mxu0  ;;  %p1685_p7 = scmp.lt.s32.totalorder %s1683_s17, %s1677_s11 }
 0x528   : > { %v1283_v41 = vpop.f32.mrb[11].mxu0 }
 0x529   : > { %p1686_p5 = por %p1685_p7, %p1684_p0 }
 0x52b   : > { %p1687_p8 = pnand %p1686_p5, %p1680_p1 }
 0x54a   : > { %v800_v44 = vpop.f32.mrb[12].mxu0 }
 0x54b   : > { %922 = vrot.lane.b32.xlu0 %v800_v44, %s1796_s14  ;;  %v1294_v45 = vpop.f32.mrb[13].mxu0 }
 0x54c   : > { %v803_v46 = vpop.f32.mrb[14].mxu0 }
 0x54d   : > { %v1295_v47 = vpop.f32.mrb[15].mxu0 }
 0x552   : > { %v911_v48 = vpop.f32.mrb[16].mxu0 }
 0x553   : > { %926 = vrot.lane.b32.xlu1 %v911_v48, %s1797_s30  ;;  %v1306_v49 = vpop.f32.mrb[17].mxu0 }
 0x554   : > { %v914_v50 = vpop.f32.mrb[18].mxu0 }
 0x555   : > { %v1307_v51 = vpop.f32.mrb[19].mxu0 }
 0x598   : > { %v919_v52 = vpop.permute.xlu1 %918 }
 0x599   : > { %v929_v0 = vsel %vm474_vm2, %v577_v34, %v919_v52 }
 0x5bd   : > { %v923_v53 = vpop.permute.xlu0 %922 }
 0x5be   : > { %v931_v54 = vsel %vm930_vm5, %v929_v0, %v923_v53 }
 0x5c5   : > { %v927_v55 = vpop.permute.xlu1 %926 }
 0x5c6   : > { %v933_v56 = vsel %vm932_vm6, %v931_v54, %v927_v55 }
 0x5c7   : > { %v934_v57 = vpack.c.bf16 %v933_v56, %v933_v56 }
 0x5c9   : > { %1313 = vmatmul.mubr.msk.bf16.vlgmr.msra.gmra.mrb[16].mxu1 %vm416_vm1, %v934_v57 }
 0x69c   : > { %v995_v59 = vpop.f32.mrb[16].mxu1 }
 0x69d   : > { %v996_v60 = vadd.f32 %v1220_v58, %v995_v59  ;;  %v1314_v61 = vpop.f32.mrb[17].mxu1 }
 0x69e   : > { %v998_v62 = vpop.f32.mrb[18].mxu1 }
 0x69f   : > { %v1315_v63 = vpop.f32.mrb[19].mxu1  ;;  %v1001_v1 = vadd.f32 %v996_v60, %v2127_v3 }
 0x6a1   : > { %v1002_v2 = vsel %vm416_vm1, %v1001_v1, 0.0 }
 0x6a2   : > { %1003 = vadd.xlane.f32.xlu0 %v1002_v2 }
 0x72f   : > { %v1004_v4 = vpop.xlane.xlu0 %1003 }
 0x730   : > { %v1006_v5 = vmul.f32 0.03125, %v1004_v4 }
 0x732   : > { %v1007_v6 = vsub.f32 %v1001_v1, %v1006_v5 }
 0x734   : > { %v1008_v7 = vmul.f32 %v1007_v6, %v1007_v6 }
 0x736   : > { %v1009_v8 = vsel %vm416_vm1, %v1008_v7, 0.0 }
 0x737   : > { %1010 = vadd.xlane.f32.xlu1 %v1009_v8 }
 0x7c4   : > { %v1011_v9 = vpop.xlane.xlu1 %1010 }
 0x7c5   : > { %v1012_v10 = vmul.f32 0.03125, %v1011_v9 }
 0x7c7   : > { %v1013_v12 = vadd.f32 1e-05, %v1012_v10 }
 0x7c9   : > { %1477 = vrsqrt.f32 %v1013_v12 }
 0x7d3   : > { %v1478_v13 = vpop.eup %1477 }
 0x7d4   : > { %v1015_v3 = vmul.f32 %v1478_v13, %v1007_v6 }
 0x7d6   : > { %v1023_v16 = vmul.f32 %v1224_v14, %v1015_v3 }
 0x7d8   : > { %v1031_v17 = vadd.f32 %v1225_v15, %v1023_v16 }
 0x7da   : > { %v1032_v18 = vpack.c.bf16 %v1031_v17, %v1031_v17 }
 0x7dc   : > { %1034 = vst.msk [vmem:[%s389_s20] sm:$0xf] %vm1033_vm7, %v1032_v18 }
 0x7dd   : > { %1690 = shalt.err (!%p1687_p8)
}
 0x7de   : > { %s1691_s1 = scalar_lea.hbm %s2206_s13, 64  ;;  %s1695_s8 = scalar_lea.hbm %s2285_s18, 128 }
 0x7df   : > { %p1692_p3 = scmp.ne.s32.totalorder %s2206_s13, %s1691_s1  ;;  %p1696_p13 = scmp.lt.u32.totalorder %s2206_s13, %s2285_s18 }
 0x7e0   : > { %p1697_p12 = scmp.lt.u32.totalorder %s1695_s8, %s1691_s1  ;;  %p1699_p2 = scmp.lt.u32.totalorder %s1691_s1, %s2206_s13 }
 0x7e1   : > { %p1693_p11 = pnand %p1692_p3, %p2286_p9 }
 0x7e2   : > { %p1698_p4 = por %p1697_p12, %p1696_p13 }
 0x7e3   : > { %p1694_p6 = pneg %p1693_p11 }
 0x7e4   : > { %p1700_p10 = por %p1699_p2, %p1698_p4 }
 0x7e6   : > { %p1701_p1 = pnand %p1700_p10, %p1694_p6 }
 0x7e8   : > { %1704 = shalt.err (!%p1701_p1)
}
 0x7e9   : > { %1342 = dma.vmem_to_hbm [thread:$0]  (%p2286_p9), %s2208_s16, 64, %s2206_s13, %s1036_s22  }
 0x7ea PF: > { %s1062_s12 = sand.u32 1, %s1751_s24   ;;  %p2287_p0 = scmp.ne.s32.totalorder %s2281_s10, 0 }
 0x7eb   : > { %p2288_p7 = scmp.ge.s32.totalorder %s1771_s29, 2  ;;  %s1063_s7 = scalar_lea.sflag [#allocation4], %s1062_s12 }
 0x7ed   : > { %p1368_p5 = pnand %p2288_p7, %p2287_p0 }
 0x7ef   : > { %1746 = dma.done.wait (!%p1368_p5), %s1063_s7, 64  }
 0x7f0   : > { %1748 = vsyncadd (!%p1368_p5), %s1063_s7, 4294967232  ;;  %s26_s29 = sadd.s32 1, %s1771_s29   ;;  %s2289_s24 = smov %s1755_s25 }
 0x7f1   : > { %p23_p8 = scmp.ge.s32.totalorder %s26_s29, 4   ;;  %s2290_s25 = smov %s1759_s26 }
 0x7f2   : > { %s2291_s26 = smov %s2051_s23  ;;  %s2292_s27 = smov %s1767_s28 }
 0x7f3   : > { %s2293_s28 = smov %s2295_s15  ;;  %25 = sbr.rel (!%p23_p8) target bundleno = 12 (0xc), region = 117 }
 0x7fa   :  { %1068 = vsyncpa [#allocation3], 1 }
 0x7fb   :  { %1070 = vsyncpa [#allocation3 + $0x1], 1 }
 0x7fc   :  { %1071 = vsyncpa [#allocation6], 1 }
 0x7fd   :  { %1072 = vsyncpa [#allocation9], 1 }
 0x7fe   :  { %1073 = vsyncpa [#allocation12], 1 }
 0x7ff   :  { %1074 = vsyncpa [#allocation4], 1 }
 0x800   :  { %1076 = vsyncpa [#allocation4 + $0x1], 1 }

</bundles_post_ra>
